<compile_context>
chip_gen: v7x
topology: tpu7x:2x2x1
jax: 0.10.0
libtpu: 0.0.40
codegen_flags: <defaults>
</compile_context>

<pallas_src>
import math

import jax
import jax.numpy as jnp
from jax.experimental import pallas as pl
from jax.experimental.pallas import tpu as pltpu


def _default_vmem_limit():
    """Generation-aware scoped-VMEM limit (leave headroom on v7x's 64 MiB)."""
    try:
        cap = getattr(pltpu.get_tpu_info(), "vmem_capacity_bytes", None)
    except Exception:  # pragma: no cover - info query is best-effort
        cap = None
    if cap is not None and cap <= 64 * 1024 * 1024:
        return 48 * 1024 * 1024          # v7x: stay well under 64 MiB physical
    return 64 * 1024 * 1024              # v5e / v6e: 128 MiB physical


_VMEM_LIMIT = _default_vmem_limit()


def _pick_tile(dim, candidates):
    """Largest candidate that exactly divides `dim`; else the full extent."""
    for c in candidates:
        if c <= dim and dim % c == 0:
            return c
    return dim                            # full-extent block is always legal


# ----------------------------------------------------------------------------
# Kernel 1: tiled dense layer   y = x @ Wt + b   (K-tiled, f32 accumulator)
#   x  : (N, d_in)     any float dtype, cast to bf16 for the MXU
#   Wt : (d_in, d_out) bf16 (pre-transposed once at param-prep time)
#   b  : (1, d_out)    f32
# ----------------------------------------------------------------------------
def _linear_kernel(x_ref, wt_ref, b_ref, o_ref, acc_ref):
    kk = pl.program_id(2)

    @pl.when(kk == 0)
    def _init():
        acc_ref[...] = jnp.zeros_like(acc_ref)

    acc_ref[...] += jnp.dot(x_ref[...].astype(jnp.bfloat16),
                            wt_ref[...].astype(jnp.bfloat16),
                            preferred_element_type=jnp.float32)

    @pl.when(kk == pl.num_programs(2) - 1)
    def _store():
        o_ref[...] = (acc_ref[...] +
                      b_ref[...].astype(jnp.float32)).astype(o_ref.dtype)


def linear_pallas(x2d, wt, b2, out_dtype, *, tm=256, tn=256, tk=512):
    """y = x2d @ wt + b2, pipelined over a (rows, out-cols, K) grid."""
    N, d_in = x2d.shape
    d_out = wt.shape[1]
    TM = _pick_tile(N, (tm, 128, 64, 32, 16, 8))
    TN = _pick_tile(d_out, (tn, 512, 128))
    TK = _pick_tile(d_in, (tk, 256, 128))
    grid = (N // TM, d_out // TN, d_in // TK)
    return pl.pallas_call(
        _linear_kernel,
        out_shape=jax.ShapeDtypeStruct((N, d_out), out_dtype),
        grid=grid,
        in_specs=[
            pl.BlockSpec((TM, TK), lambda i, j, k: (i, k)),
            pl.BlockSpec((TK, TN), lambda i, j, k: (k, j)),
            pl.BlockSpec((1, TN), lambda i, j, k: (0, j)),
        ],
        out_specs=pl.BlockSpec((TM, TN), lambda i, j, k: (i, j)),
        scratch_shapes=[pltpu.VMEM((TM, TN), jnp.float32)],
        compiler_params=pltpu.CompilerParams(
            dimension_semantics=("parallel", "parallel", "arbitrary"),
            vmem_limit_bytes=_VMEM_LIMIT),
    )(x2d, wt, b2)


# ----------------------------------------------------------------------------
# Kernel 2a: single-pass attention (full KV resident per (batch, q-tile)).
# All heads are processed inside the block with static lane slices; each
# normalized head is streamed into its own lane slice of the output block.
# ----------------------------------------------------------------------------
def _make_single_pass_kernel(num_heads, d_k):
    def kernel(q_ref, k_ref, v_ref, o_ref):
        q = q_ref[0]                       # (TQ, D)  bf16; scale folded into Wq
        k = k_ref[0]                       # (Skv, D) bf16
        v = v_ref[0]                       # (Skv, D) bf16
        for hh in range(num_heads):
            sl = slice(hh * d_k, (hh + 1) * d_k)
            qh, kh, vh = q[:, sl], k[:, sl], v[:, sl]
            # scores: contract the last dims (no explicit k.T).
            s = jax.lax.dot_general(
                qh, kh, (((1,), (1,)), ((), ())),
                preferred_element_type=jnp.float32)            # (TQ, Skv) f32
            m = jnp.max(s, axis=-1, keepdims=True)
            p = jnp.exp(s - m)
            l = jnp.sum(p, axis=-1, keepdims=True)
            ctx = jax.lax.dot_general(
                p.astype(vh.dtype), vh, (((1,), (0,)), ((), ())),
                preferred_element_type=jnp.float32)            # (TQ, d_k)
            o_ref[0, :, pl.ds(hh * d_k, d_k)] = (
                ctx * pl.reciprocal(l, approx=True)).astype(o_ref.dtype)
    return kernel


# ----------------------------------------------------------------------------
# Kernel 2b: flash-style online-softmax fallback for very long KV sequences.
# ----------------------------------------------------------------------------
def _make_flash_kernel(num_heads, d_k):
    def kernel(q_ref, k_ref, v_ref, o_ref, m_sc, l_sc, acc_sc):
        ki = pl.program_id(2)

        @pl.when(ki == 0)
        def _init():
            m_sc[...] = jnp.full(m_sc.shape, -jnp.inf, dtype=m_sc.dtype)
            l_sc[...] = jnp.zeros_like(l_sc)
            acc_sc[...] = jnp.zeros_like(acc_sc)

        q = q_ref[0]    # (TQ, D) bf16
        k = k_ref[0]    # (TK, D) bf16
        v = v_ref[0]    # (TK, D) bf16

        for hh in range(num_heads):
            sl = slice(hh * d_k, (hh + 1) * d_k)
            qh, kh, vh = q[:, sl], k[:, sl], v[:, sl]
            s = jax.lax.dot_general(
                qh, kh, (((1,), (1,)), ((), ())),
                preferred_element_type=jnp.float32)            # (TQ, TK)
            m_prev = m_sc[hh]
            m_new = jnp.maximum(m_prev, jnp.max(s, axis=-1, keepdims=True))
            alpha = jnp.exp(m_prev - m_new)
            p = jnp.exp(s - m_new)
            l_sc[hh] = alpha * l_sc[hh] + jnp.sum(p, axis=-1, keepdims=True)
            acc_sc[hh] = alpha * acc_sc[hh] + jax.lax.dot_general(
                p.astype(vh.dtype), vh, (((1,), (0,)), ((), ())),
                preferred_element_type=jnp.float32)
            m_sc[hh] = m_new

        @pl.when(ki == pl.num_programs(2) - 1)
        def _finalize():
            # Stream each normalized head into its lane slice (no concat).
            for hh in range(num_heads):
                inv_l = pl.reciprocal(l_sc[hh], approx=True)
                o_ref[0, :, pl.ds(hh * d_k, d_k)] = (
                    acc_sc[hh] * inv_l).astype(o_ref.dtype)
    return kernel


def attention_pallas(q_arr, k_arr, v_arr, *, num_heads, d_k,
                     q_col=0, k_col=0, v_col=0, out_dtype=jnp.bfloat16,
                     tq=256, tk=512, single_pass_max_kv=2048):
    """q/k/v arrays are (B, S, C) with head-fused features in the last dim.

    The same array may be passed for all three (fused-QKV layout (B, S, 3*D));
    `*_col` selects which D-wide column block holds q / k / v, so the fused
    projection output is consumed directly.  Heads stay packed in the lane
    dim; no head transposes touch HBM.  Key/value may use a different sequence
    length than the query.
    """
    B, Sq, _ = q_arr.shape
    Skv = k_arr.shape[1]
    D = num_heads * d_k
    TQ = _pick_tile(Sq, (tq, 256, 128, 64, 32, 16, 8))
    out_shape = jax.ShapeDtypeStruct((B, Sq, D), out_dtype)

    if Skv <= single_pass_max_kv:
        # Single-pass softmax: full K/V resident per (batch, q-tile).
        grid = (B, Sq // TQ)
        return pl.pallas_call(
            _make_single_pass_kernel(num_heads, d_k),
            out_shape=out_shape,
            grid=grid,
            in_specs=[
                pl.BlockSpec((1, TQ, D), lambda b, qi, c=q_col: (b, qi, c)),
                pl.BlockSpec((1, Skv, D), lambda b, qi, c=k_col: (b, 0, c)),
                pl.BlockSpec((1, Skv, D), lambda b, qi, c=v_col: (b, 0, c)),
            ],
            out_specs=pl.BlockSpec((1, TQ, D), lambda b, qi: (b, qi, 0)),
            compiler_params=pltpu.CompilerParams(
                dimension_semantics=("parallel", "parallel"),
                vmem_limit_bytes=_VMEM_LIMIT),
        )(q_arr, k_arr, v_arr)

    # Flash-style fallback for very long KV (online softmax over KV tiles).
    TK = _pick_tile(Skv, (tk, 512, 256, 128, 64, 32, 16, 8))
    grid = (B, Sq // TQ, Skv // TK)          # KV (reduction) axis last
    return pl.pallas_call(
        _make_flash_kernel(num_heads, d_k),
        out_shape=out_shape,
        grid=grid,
        in_specs=[
            pl.BlockSpec((1, TQ, D), lambda b, qi, ki, c=q_col: (b, qi, c)),
            pl.BlockSpec((1, TK, D), lambda b, qi, ki, c=k_col: (b, ki, c)),
            pl.BlockSpec((1, TK, D), lambda b, qi, ki, c=v_col: (b, ki, c)),
        ],
        out_specs=pl.BlockSpec((1, TQ, D), lambda b, qi, ki: (b, qi, 0)),
        scratch_shapes=[
            pltpu.VMEM((num_heads, TQ, 1), jnp.float32),      # running max
            pltpu.VMEM((num_heads, TQ, 1), jnp.float32),      # running denom
            pltpu.VMEM((num_heads, TQ, d_k), jnp.float32),    # running context
        ],
        compiler_params=pltpu.CompilerParams(
            dimension_semantics=("parallel", "parallel", "arbitrary"),
            vmem_limit_bytes=_VMEM_LIMIT),
    )(q_arr, k_arr, v_arr)


# ----------------------------------------------------------------------------
# One-time parameter preparation (layout + precision) and module forward
# ----------------------------------------------------------------------------
def prepare_params(params, h):
    """Transpose / fuse / pre-scale / cast the four nn.Linear parameter sets once."""
    d_model = params["Wq"].shape[0]
    d_k = d_model // h
    scale = jnp.float32(d_k) ** -0.5
    # Fold the attention scale into the Q projection:
    #   ((xWq^T + bq) * s) k^T == (x(s*Wq)^T + s*bq) k^T   (exact)
    w_qkv = jnp.concatenate(
        [params["Wq"] * scale, params["Wk"], params["Wv"]], axis=0)   # (3D, D)
    b_qkv = jnp.concatenate(
        [params["bq"] * scale, params["bk"], params["bv"]], axis=0)   # (3D,)
    return {
        "Wqkv_t": w_qkv.T.astype(jnp.bfloat16),                       # (D, 3D)
        "bqkv": b_qkv.reshape(1, -1).astype(jnp.float32),
        "Wo_t": params["Wo"].T.astype(jnp.bfloat16),                  # (D, D)
        "bo": params["bo"].reshape(1, -1).astype(jnp.float32),
    }


def multi_headed_attention_forward(query, key, value, prepared, h, *,
                                   attn_kwargs=None):
    kw = dict(attn_kwargs) if attn_kwargs else {}
    B, Sq, d_model = query.shape
    d_k = d_model // h
    D = d_model

    if (query is key) and (key is value):
        # Self-attention: single fused QKV matmul; the attention kernel reads
        # the q / k / v column blocks straight out of the fused (B,S,3D) tensor.
        qkv = linear_pallas(query.reshape(B * Sq, D), prepared["Wqkv_t"],
                            prepared["bqkv"], jnp.bfloat16)
        qkv = qkv.reshape(B, Sq, 3 * D)
        ctx = attention_pallas(qkv, qkv, qkv, num_heads=h, d_k=d_k,
                               q_col=0, k_col=1, v_col=2, **kw)
    else:
        # Distinct query/key/value inputs: three projections (weight slices of
        # the prepared fused weight; Q slice already carries the scale).
        def proj(x, col):
            b_, s_, _ = x.shape
            wt = prepared["Wqkv_t"][:, col * D:(col + 1) * D]
            bb = prepared["bqkv"][:, col * D:(col + 1) * D]
            return linear_pallas(x.reshape(b_ * s_, D), wt, bb,
                                 jnp.bfloat16).reshape(b_, s_, D)
        ctx = attention_pallas(proj(query, 0), proj(key, 1), proj(value, 2),
                               num_heads=h, d_k=d_k, **kw)

    out = linear_pallas(ctx.reshape(B * Sq, D), prepared["Wo_t"],
                        prepared["bo"], jnp.float32)
    return out.reshape(B, Sq, d_model)


# ----------------------------------------------------------------------------
# Pure-JAX f32 reference for sanity checking
# ----------------------------------------------------------------------------
def _reference(query, key, value, params, h):
    B, S, d_model = query.shape
    d_k = d_model // h

    def lin(x, W, b):
        return x @ W.T + b

    def split(x):
        return x.reshape(B, -1, h, d_k).transpose(0, 2, 1, 3)

    q = split(lin(query, params["Wq"], params["bq"]))
    k = split(lin(key, params["Wk"], params["bk"]))
    v = split(lin(value, params["Wv"], params["bv"]))
    scores = jnp.einsum("bhqd,bhkd->bhqk", q, k) * (d_k ** -0.5)
    p = jax.nn.softmax(scores, axis=-1)
    ctx = jnp.einsum("bhqk,bhkd->bhqd", p, v)
    x = ctx.transpose(0, 2, 1, 3).reshape(B, -1, d_model)
    return lin(x, params["Wo"], params["bo"])


if __name__ == "__main__":
    # Small, TPU-aligned shapes consistent with the module: h=4 heads,
    # d_model=128 (d_k=32), batch=2, seq=256.
    B, S, d_model, h = 2, 256, 128, 4

    key0 = jax.random.PRNGKey(0)
    ks = jax.random.split(key0, 11)
    bound = 1.0 / math.sqrt(d_model)   # torch nn.Linear default init range

    def init_w(k):
        return jax.random.uniform(k, (d_model, d_model), jnp.float32, -bound, bound)

    def init_b(k):
        return jax.random.uniform(k, (d_model,), jnp.float32, -bound, bound)

    params = {
        "Wq": init_w(ks[0]), "bq": init_b(ks[1]),
        "Wk": init_w(ks[2]), "bk": init_b(ks[3]),
        "Wv": init_w(ks[4]), "bv": init_b(ks[5]),
        "Wo": init_w(ks[6]), "bo": init_b(ks[7]),
    }
    prepared = prepare_params(params, h)

    x_self = jax.random.normal(ks[8], (B, S, d_model), jnp.float32)
    k_in = jax.random.normal(ks[9], (B, S, d_model), jnp.float32)
    v_in = jax.random.normal(ks[10], (B, S, d_model), jnp.float32)

    # 1) Self-attention path (fused QKV projection + single-pass attention).
    out_self = multi_headed_attention_forward(x_self, x_self, x_self, prepared, h)
    out_self = jax.block_until_ready(out_self)
    ref_self = _reference(x_self, x_self, x_self, params, h)
    assert out_self.shape == (B, S, d_model)
    assert jnp.allclose(out_self, ref_self, atol=5e-2, rtol=5e-2), (
        "self-attention mismatch, max |err| = "
        f"{jnp.max(jnp.abs(out_self - ref_self)):.4f}")

    # 2) Distinct query / key / value inputs (general module semantics).
    out_x = multi_headed_attention_forward(x_self, k_in, v_in, prepared, h)
    out_x = jax.block_until_ready(out_x)
    ref_x = _reference(x_self, k_in, v_in, params, h)
    assert out_x.shape == (B, S, d_model)
    assert jnp.allclose(out_x, ref_x, atol=5e-2, rtol=5e-2), (
        "cross-attention mismatch, max |err| = "
        f"{jnp.max(jnp.abs(out_x - ref_x)):.4f}")

    # 3) Force the flash (online-softmax) fallback path so it stays exercised.
    out_fl = multi_headed_attention_forward(
        x_self, x_self, x_self, prepared, h,
        attn_kwargs={"single_pass_max_kv": 0, "tq": 128, "tk": 128})
    out_fl = jax.block_until_ready(out_fl)
    assert jnp.allclose(out_fl, ref_self, atol=5e-2, rtol=5e-2), (
        "flash-fallback mismatch, max |err| = "
        f"{jnp.max(jnp.abs(out_fl - ref_self)):.4f}")

    print("KERNEL_OK")
</pallas_src>

<mosaic_0001>
module attributes {stable_mosaic.version = 11 : i64} {
  func.func @_linear_kernel(%arg0: i32, %arg1: i32, %arg2: i32, %arg3: memref<256x128xf32, #tpu.memory_space<vmem>>, %arg4: memref<128x128xbf16, #tpu.memory_space<vmem>>, %arg5: memref<1x128xf32, #tpu.memory_space<vmem>>, %arg6: memref<256x128xbf16, #tpu.memory_space<vmem>>, %arg7: memref<256x128xf32, #tpu.memory_space<vmem>>) attributes {dimension_semantics = [#tpu.dimension_semantics<parallel>, #tpu.dimension_semantics<parallel>, #tpu.dimension_semantics<arbitrary>], iteration_bounds = array<i64: 2, 3, 1>, scalar_prefetch = 0 : i64, scratch_operands = 1 : i64, tpu.core_type = #tpu.core_type<tc>, window_params = [{transform_indices = @transform_0, window_bounds = array<i64: 256, 128>}, {transform_indices = @transform_1, window_bounds = array<i64: 128, 128>}, {transform_indices = @transform_2, window_bounds = array<i64: 1, 128>}, {transform_indices = @transform_3, window_bounds = array<i64: 256, 128>}]} {
    %c0_i32 = arith.constant 0 : i32
    %0 = arith.cmpi eq, %arg2, %c0_i32 : i32
    %1 = arith.extui %0 : i1 to i32
    %c0_i32_0 = arith.constant 0 : i32
    %2 = arith.cmpi ne, %1, %c0_i32_0 : i32
    scf.if %2 {
      %cst_10 = arith.constant 0.000000e+00 : f32
      %13 = vector.broadcast %cst_10 : f32 to vector<256x128xf32>
      %c0_11 = arith.constant 0 : index
      %c0_12 = arith.constant 0 : index
      %14 = vector.load %arg7[%c0_11, %c0_12] : memref<256x128xf32, #tpu.memory_space<vmem>>, vector<256x128xf32>
      tpu.vector_store %arg7[%c0_11, %c0_12], %13 {strides = array<i32>} : memref<256x128xf32, #tpu.memory_space<vmem>>, vector<256x128xf32>,
    } else {
    }
    %c0 = arith.constant 0 : index
    %c0_1 = arith.constant 0 : index
    %3 = vector.load %arg7[%c0, %c0_1] : memref<256x128xf32, #tpu.memory_space<vmem>>, vector<256x128xf32>
    %c0_2 = arith.constant 0 : index
    %c0_3 = arith.constant 0 : index
    %4 = vector.load %arg3[%c0_2, %c0_3] : memref<256x128xf32, #tpu.memory_space<vmem>>, vector<256x128xf32>
    %5 = arith.truncf %4 : vector<256x128xf32> to vector<256x128xbf16>
    %c0_4 = arith.constant 0 : index
    %c0_5 = arith.constant 0 : index
    %6 = vector.load %arg4[%c0_4, %c0_5] : memref<128x128xbf16, #tpu.memory_space<vmem>>, vector<128x128xbf16>
    %cst = arith.constant dense<0.000000e+00> : vector<256x128xf32>
    %7 = tpu.matmul %5, %6, %cst {dimension_numbers = #tpu.dot_dimension_numbers<[1], [0], [0], [1], [0, 0, 1, 1], [], []>} : vector<256x128xbf16>, vector<128x128xbf16>, vector<256x128xf32> -> vector<256x128xf32>
    %8 = arith.addf %3, %7 : vector<256x128xf32>
    %c0_6 = arith.constant 0 : index
    %c0_7 = arith.constant 0 : index
    %9 = vector.load %arg7[%c0_6, %c0_7] : memref<256x128xf32, #tpu.memory_space<vmem>>, vector<256x128xf32>
    tpu.vector_store %arg7[%c0_6, %c0_7], %8 {strides = array<i32>} : memref<256x128xf32, #tpu.memory_space<vmem>>, vector<256x128xf32>,
    %c0_i32_8 = arith.constant 0 : i32
    %10 = arith.cmpi eq, %arg2, %c0_i32_8 : i32
    %11 = arith.extui %10 : i1 to i32
    %c0_i32_9 = arith.constant 0 : i32
    %12 = arith.cmpi ne, %11, %c0_i32_9 : i32
    scf.if %12 {
      %c0_10 = arith.constant 0 : index
      %c0_11 = arith.constant 0 : index
      %13 = vector.load %arg7[%c0_10, %c0_11] : memref<256x128xf32, #tpu.memory_space<vmem>>, vector<256x128xf32>
      %c0_12 = arith.constant 0 : index
      %c0_13 = arith.constant 0 : index
      %14 = vector.load %arg5[%c0_12, %c0_13] : memref<1x128xf32, #tpu.memory_space<vmem>>, vector<1x128xf32>
      %15 = vector.broadcast %14 : vector<1x128xf32> to vector<256x128xf32>
      %16 = arith.addf %13, %15 : vector<256x128xf32>
      %17 = arith.truncf %16 : vector<256x128xf32> to vector<256x128xbf16>
      %c0_14 = arith.constant 0 : index
      %c0_15 = arith.constant 0 : index
      %18 = vector.load %arg6[%c0_14, %c0_15] : memref<256x128xbf16, #tpu.memory_space<vmem>>, vector<256x128xbf16>
      tpu.vector_store %arg6[%c0_14, %c0_15], %17 {strides = array<i32>} : memref<256x128xbf16, #tpu.memory_space<vmem>>, vector<256x128xbf16>,
    } else {
    }
    return
  }
  func.func @transform_0(%arg0: i32, %arg1: i32, %arg2: i32) -> (i32, i32) {
    %c0_i32 = arith.constant 0 : i32
    return %arg0, %arg2 : i32, i32
  }
  func.func @transform_1(%arg0: i32, %arg1: i32, %arg2: i32) -> (i32, i32) {
    %c0_i32 = arith.constant 0 : i32
    return %arg2, %arg1 : i32, i32
  }
  func.func @transform_2(%arg0: i32, %arg1: i32, %arg2: i32) -> (i32, i32) {
    %c0_i32 = arith.constant 0 : i32
    %c0_i32_0 = arith.constant 0 : i32
    return %c0_i32, %arg1 : i32, i32
  }
  func.func @transform_3(%arg0: i32, %arg1: i32, %arg2: i32) -> (i32, i32) {
    %c0_i32 = arith.constant 0 : i32
    return %arg0, %arg1 : i32, i32
  }
}

</mosaic_0001>

<bundles_post_ra>
// kernel: tpu_custom_call.1
= control target key start
LH: loop header
LB: loop body
LE: loop exit
PB: predicated region body
PF: predicated region fallthrough
CT: control target
= control target key end

     0   :  { %s2271_s0 = inlined_call_operand.hbm [shape: f32[512,128], index: 0, kind: input, shape index: {}]   ;;  %s2272_s1 = inlined_call_operand.hbm [shape: bf16[128,384], index: 1, kind: input, shape index: {}]   ;;  %s2273_s2 = inlined_call_operand.hbm [shape: f32[1,384], index: 2, kind: input, shape index: {}]   ;;  %s2274_s3 = inlined_call_operand.hbm [shape: bf16[512,384], index: 3, kind: output, shape index: {}]  }
   0x1   :  { %2287 = sst [smem:[#allocation22_spill]] %s2271_s0 }
   0x2   :  { %2288 = sst [smem:[#allocation23_spill]] %s2272_s1 }
   0x3   :  { %2289 = sst [smem:[#allocation24_spill]] %s2274_s3 }
   0x4   :  { %8 = vsyncpa [#allocation4], 0 }
   0x5   :  { %10 = vsyncpa [#allocation4 + $0x1], 0 }
   0x6   :  { %11 = vsyncpa [#allocation7], 0 }
   0x7   :  { %13 = vsyncpa [#allocation7 + $0x1], 0 }
   0x8   :  { %14 = vsyncpa [#allocation5], 0 }
   0x9   :  { %16 = vsyncpa [#allocation5 + $0x1], 0  ;;  %s1784_s12 = smov 0   ;;  %s1786_s13 = smov 0  }
   0xa   :  { %s1788_s14 = smov 0   ;;  %s1790_s15 = smov 0  }
   0xb   :  { %s1792_s16 = smov 0   ;;  %s1794_s17 = smov 0  }
   0xc   :  { %s1796_s18 = smov 0   ;;  %s1798_s19 = smov 0  }
   0xd   :  { %s1800_s20 = smov 0   ;;  %s1802_s21 = smov 0  }
   0xe   :  { %s1804_s22 = smov 0   ;;  %s1806_s23 = smov 0  }
   0xf   :  { %s1808_s24 = smov 0   ;;  %s1810_s25 = smov 0  }
  0x10 LB: > { %2290 = sst [smem:[#allocation13_spill]] %s1730_s20  ;;  %s37_s26 = sadd.s32 1, %s1742_s23  ;;  %s1750_s25 = sphi %s1810_s25, %s22_s25   ;;  %s1746_s24 = sphi %s1808_s24, %s2333_s24   ;;  %s1742_s23 = sphi %s1806_s23, %s2345_s23   ;;  %s1738_s22 = sphi %s1804_s22, %s2331_s22   ;;  %s1734_s21 = sphi %s1802_s21, %s2344_s21   ;;  %s1730_s20 = sphi %s1800_s20, %s2343_s20   ;;  %s1726_s19 = sphi %s1798_s19, %s2342_s19   ;;  %s1722_s18 = sphi %s1796_s18, %s2341_s18   ;;  %s1718_s17 = sphi %s1794_s17, %s2340_s17   ;;  %s1714_s16 = sphi %s1792_s16, %s2339_s16   ;;  %s1710_s15 = sphi %s1790_s15, %s2338_s15   ;;  %s1706_s14 = sphi %s1788_s14, %s2337_s14   ;;  %s1702_s13 = sphi %s1786_s13, %s2336_s13   ;;  %s1698_s12 = sphi %s1784_s12, %s2335_s12  }
  0x11   : > { %2291 = sst [smem:[#allocation14_spill]] %s1734_s21  ;;  %p2277_p0 = scmp.eq.s32.totalorder %s1750_s25, 0 }
  0x12   : > { %2292 = sst [smem:[#allocation15_spill]] %s1738_s22  ;;  %p1858_p1 = scmp.ge.s32.totalorder %s37_s26, 3 }
  0x13   : > { %2293 = sst [smem:[#allocation16_spill]] %s1746_s24  ;;  %p85_p2 = scmp.ne.s32.totalorder %s1718_s17, %s1714_s16 }
  0x14   : > { %p2276_p4 = scmp.lt.s32.totalorder %s1750_s25, 6  ;;  %s191_s29 = sand.u32 1, %s1750_s25  }
  0x15   : > { %p87_p5 = por %p85_p2, %p2277_p0  ;;  %s2275_s30 = sand.u32 1, %s1718_s17  }
  0x16   : > { %s1087_s4 = sshll.u32 %s2275_s30, 6  ;;  %s1088_s5 = sshll.u32 %s1742_s23, 6 }
  0x17   : > { %s2295_s1 = sld [smem:[#allocation23_spill]]  ;;  %s195_s9 = scalar_lea.vmem [#allocation6], %s1087_s4 }
  0x18   : > { %s204_s10 = sshll.u32 %s195_s9, 4  ;;  %p1882_p6 = pnand %p2276_p4, %p87_p5  ;;  %s1886_s10 = int_to_ptr.vmem [resolvable:$true] %s204_s10 }
  0x19   : > { %s1889_s30 = scalar_lea.sflag [#allocation7], %s191_s29 }
  0x1a   : > { %p2283_p9 = pneg %p1882_p6 }
  0x1d   : > { %s1878_s8 = scalar_lea.hbm %s2295_s1, %s1088_s5  ;;  %s1515_s7 = scalar_lea.hbm %s2295_s1, 3072 }
  0x1e   : > { %s1510_s5 = scalar_lea.hbm %s1878_s8, 1024  ;;  %p1516_p12 = scmp.lt.u32.totalorder %s1878_s8, %s2295_s1 }
  0x1f   : > { %p1511_p8 = scmp.ne.s32.totalorder %s1878_s8, %s1510_s5  ;;  %p1517_p13 = scmp.lt.u32.totalorder %s1515_s7, %s1510_s5 }
  0x20   : > { %p1519_p5 = scmp.lt.u32.totalorder %s1510_s5, %s1878_s8 }
  0x21   : > { %p1513_p10 = pnand %p2283_p9, %p1511_p8  ;;  %p1518_p2 = por %p1517_p13, %p1516_p12 }
  0x23   : > { %p1514_p11 = pneg %p1513_p10  ;;  %p1520_p4 = por %p1519_p5, %p1518_p2 }
  0x25   : > { %p1521_p3 = pnand %p1520_p4, %p1514_p11 }
  0x27   : > { %1524 = shalt.err (!%p1521_p3)
}
  0x28   : > { %s1525_s29 = scalar_lea.vmem %s1886_s10, 1024  ;;  %s1752_s4 = smov [#allocation6]  }
  0x29   : > { %p1526_p8 = scmp.ne.s32.totalorder %s1886_s10, %s1525_s29  ;;  %s1530_s6 = sshll.u32 %s1752_s4, 4  ;;  %s1531_s6 = int_to_ptr.vmem [resolvable:$false] %s1530_s6 }
  0x2a   : > { %s1532_s28 = scalar_lea.vmem %s1531_s6, 2048  ;;  %p1533_p7 = scmp.lt.s32.totalorder %s1886_s10, %s1531_s6 }
  0x2b   : > { %p1528_p10 = pnand %p1526_p8, %p2283_p9  ;;  %p1534_p12 = scmp.lt.s32.totalorder %s1532_s28, %s1525_s29 }
  0x2d   : > { %p1529_p0 = pneg %p1528_p10  ;;  %p1535_p13 = por %p1534_p12, %p1533_p7 }
  0x2f   : > { %p1536_p2 = pnand %p1535_p13, %p1529_p0 }
  0x31   : > { %1539 = shalt.err (!%p1536_p2)
}
  0x32   : > { %s1753_s5 = smov 192   ;;  %s1754_s7 = smov 64  }
  0x33   : > { %s1755_s9 = smov 4   ;;  %p229_p0 = scmp.lt.s32.totalorder %s1750_s25, 7 }
  0x34   : > { %1372 = dma.hbm_to_vmem [thread:$0]  (!%p1882_p6), %s1878_s8, 1024, %s1886_s10, %s1889_s30, %s1753_s5, %s1754_s7, %s1755_s9  }
  0x35   : > { %p2297_p3 = scmp.ge.s32.totalorder %s1750_s25, 1  ;;  %s1925_s4 = sadd.s32 4294967295, %s1750_s25  }
  0x36   : > { %s1081_s6 = sadd.s32 4294967294, %s1750_s25   ;;  %s2347_s26 = smov (%p1858_p1, %s37_s26), 0 }
  0x37   : > { %p1920_p4 = pnand %p2297_p3, %p229_p0  ;;  %2299 = sst [smem:[#allocation17_spill]] %s2347_s26 }
  0x38   : > { %s41_s28 = sadd.s32 1, %s1746_s24  ;;  %s50_s8 = sadd.s32 1, %s1730_s20 }
  0x39   : > { %s2298_s29 = scalar_select %p1920_p4, 1, 0 }
  0x3a   : > { %s2349_s28 = smov (!%p1858_p1, %s41_s28), %s1746_s24  ;;  %p57_p7 = scmp.ne.s32.totalorder %s1730_s20, %s1726_s19 }
  0x3b   : > { %p63_p11 = scmp.ne.s32.totalorder %s1726_s19, %s1722_s18  ;;  %p43_p5 = scmp.ge.s32.totalorder %s2349_s28, 2 }
  0x3c   : > { %p64_p8 = scmp.eq.s32.totalorder %s1925_s4, 0  ;;  %p2300_p10 = scmp.eq.s32.totalorder %s1750_s25, 0 }
  0x3d   : > { %s74_s5 = ssub.s32 %s1742_s23, %s2347_s26  ;;  %s2351_s28 = smov (%p43_p5, %s2349_s28), 0 }
  0x3e   : > { %p1946_p12 = por %p2300_p10, %p57_p7  ;;  %2302 = sst [smem:[#allocation18_spill]] %s2351_s28 }
  0x3f   : > { %p1954_p1 = por %p64_p8, %p63_p11  ;;  %p76_p13 = scmp.eq.s32.totalorder %s74_s5, 0 }
  0x40   : > { %s45_s18 = ssub.s32 %s1746_s24, %s2351_s28  ;;  %p2304_p2 = scmp.ne.s32.totalorder %s1714_s16, %s1710_s15 }
  0x41   : > { %s2303_s27 = scalar_select %p1954_p1, 1, 0 }
  0x42   : > { %p1963_p0 = por %p2304_p2, %p64_p8  ;;  %p48_p3 = scmp.eq.s32.totalorder %s45_s18, 0 }
  0x43   : > { %s129_s9 = sor.u32 %s74_s5, %s45_s18  ;;  %s2306_s1 = sadd.s32 1, %s1718_s17 }
  0x44   : > { %s2305_s7 = scalar_select %p1963_p0, 1, 0 }
  0x45   : > { %s1970_s26 = scalar_select %p76_p13, %s1718_s17, %s2306_s1  }
  0x46   : > { %s1973_s3 = scalar_select %p48_p3, %s1730_s20, %s50_s8  }
  0x47   : > { %2307 = sst [smem:[#allocation19_spill]] %s1970_s26  ;;  %p130_p7 = scmp.eq.s32.totalorder %s129_s9, 0 }
  0x48   : > { %2308 = sst [smem:[#allocation20_spill]] %s1973_s3  ;;  %s132_s21 = sadd.s32 1, %s1706_s14 }
  0x49   : > { %p142_p11 = scmp.ne.s32.totalorder %s1706_s14, %s1702_s13  ;;  %p143_p5 = scmp.eq.s32.totalorder %s1925_s4, 5 }
  0x4a   : > { %s1980_s15 = scalar_select %p130_p7, %s1706_s14, %s132_s21  }
  0x4b   : > { %p1982_p8 = por %p143_p5, %p142_p11  ;;  %p148_p10 = scmp.ne.s32.totalorder %s1702_s13, %s1698_s12 }
  0x4c   : > { %2309 = sst [smem:[#allocation21_spill]] %s1980_s15  ;;  %p149_p2 = scmp.eq.s32.totalorder %s1081_s6, 5 }
  0x4d   : > { %s2310_s28 = scalar_select %p1982_p8, 1, 0 }
  0x4e   : > { %s169_s5 = sand.u32 1, %s1730_s20   ;;  %p1989_p13 = por %p149_p2, %p148_p10 }
  0x4f   : > { %s1084_s1 = sshll.u32 %s169_s5, 8  ;;  %s1141_s18 = sshll.u32 %s1746_s24, 12 }
  0x50   : > { %s2311_s8 = scalar_select %p1989_p13, 1, 0 }
  0x51   : > { %s173_s9 = scalar_lea.vmem [#allocation3], %s1084_s1  ;;  %s2312_s0 = sld [smem:[#allocation22_spill]] }
  0x52   : > { %s181_s3 = sshll.u32 %s173_s9, 4  ;;  %p2313_p3 = scmp.lt.s32.totalorder %s1750_s25, 6  ;;  %s1999_s3 = int_to_ptr.vmem [resolvable:$true] %s181_s3 }
  0x53   : > { %s1089_s1 = sshll.u32 %s1742_s23, 4  ;;  %s2010_s9 = scalar_lea.sflag [#allocation4], %s169_s5 }
  0x54   : > { %p2005_p7 = pnand %p2313_p3, %p1946_p12 }
  0x56   : > { %p1542_p5 = pneg %p2005_p7 }
  0x57   : > { %s1997_s21 = scalar_lea.hbm %s2312_s0, %s1141_s18  ;;  %s1545_s18 = scalar_lea.hbm %s2312_s0, 8192 }
  0x58   : > { %s1540_s22 = scalar_lea.hbm %s1997_s21, 4096  ;;  %p1546_p12 = scmp.lt.u32.totalorder %s1997_s21, %s2312_s0 }
  0x59   : > { %p1541_p11 = scmp.ne.s32.totalorder %s1997_s21, %s1540_s22  ;;  %p1547_p3 = scmp.lt.u32.totalorder %s1545_s18, %s1540_s22 }
  0x5a   : > { %p1549_p13 = scmp.lt.u32.totalorder %s1540_s22, %s1997_s21 }
  0x5b   : > { %p1543_p10 = pnand %p1542_p5, %p1541_p11  ;;  %p1548_p9 = por %p1547_p3, %p1546_p12 }
  0x5d   : > { %p1544_p2 = pneg %p1543_p10  ;;  %p1550_p8 = por %p1549_p13, %p1548_p9 }
  0x5f   : > { %p1551_p0 = pnand %p1550_p8, %p1544_p2 }
  0x61   : > { %1554 = shalt.err (!%p1551_p0)
}
  0x62   : > { %s1555_s5 = scalar_lea.vmem %s1999_s3, 4096  ;;  %s1756_s26 = smov [#allocation3]  }
  0x63   : > { %p1556_p11 = scmp.ne.s32.totalorder %s1999_s3, %s1555_s5  ;;  %s1560_s10 = sshll.u32 %s1756_s26, 4  ;;  %s1561_s10 = int_to_ptr.vmem [resolvable:$false] %s1560_s10 }
  0x64   : > { %s1562_s20 = scalar_lea.vmem %s1561_s10, 8192  ;;  %p1563_p4 = scmp.lt.s32.totalorder %s1999_s3, %s1561_s10 }
  0x65   : > { %p1558_p10 = pnand %p1556_p11, %p1542_p5  ;;  %p1564_p12 = scmp.lt.s32.totalorder %s1562_s20, %s1555_s5 }
  0x67   : > { %p1559_p1 = pneg %p1558_p10  ;;  %p1565_p3 = por %p1564_p12, %p1563_p4 }
  0x69   : > { %p1566_p9 = pnand %p1565_p3, %p1559_p1 }
  0x6b   : > { %1569 = shalt.err (!%p1566_p9)
}
  0x6c   : > { %s1757_s24 = smov 128   ;;  %s1758_s22 = smov 8  }
  0x6d   : > { %1369 = dma.hbm_to_vmem [thread:$0]  (!%p2005_p7), %s1997_s21, 4096, %s1999_s3, %s2010_s9, %s1757_s24, %s1757_s24, %s1758_s22  }
  0x6e   : > { %s2043_s10 = scalar_lea.hbm %s2273_s2, %s1089_s1  ;;  %s2315_s5 = sand.u32 1, %s1718_s17  }
  0x6f   : > { %s217_s20 = scalar_lea.vmem [#allocation8], %s2315_s5  ;;  %s1570_s15 = scalar_lea.hbm %s2043_s10, 16 }
  0x70   : > { %s224_s0 = sshll.u32 %s217_s20, 4  ;;  %p1571_p4 = scmp.ne.s32.totalorder %s2043_s10, %s1570_s15  ;;  %s225_s0 = int_to_ptr.vmem [resolvable:$true] %s224_s0 }
  0x71   : > { %p2316_p1 = pneg %p1882_p6  ;;  %s1575_s6 = scalar_lea.hbm %s2273_s2, 48 }
  0x72   : > { %p1576_p13 = scmp.lt.u32.totalorder %s2043_s10, %s2273_s2  ;;  %p1577_p7 = scmp.lt.u32.totalorder %s1575_s6, %s1570_s15 }
  0x73   : > { %p1573_p0 = pnand %p1571_p4, %p2316_p1  ;;  %p1579_p2 = scmp.lt.u32.totalorder %s1570_s15, %s2043_s10 }
  0x74   : > { %p1578_p5 = por %p1577_p7, %p1576_p13 }
  0x75   : > { %p1574_p8 = pneg %p1573_p0 }
  0x76   : > { %p1580_p11 = por %p1579_p2, %p1578_p5 }
  0x78   : > { %p1581_p10 = pnand %p1580_p11, %p1574_p8 }
  0x7a   : > { %1584 = shalt.err (!%p1581_p10)
}
  0x7b   : > { %s1585_s24 = scalar_lea.vmem %s225_s0, 16  ;;  %p2317_p3 = pmov %p2316_p1 }
  0x7c   : > { %p1586_p12 = scmp.ne.s32.totalorder %s225_s0, %s1585_s24  ;;  %s1759_s22 = smov [#allocation8]  }
  0x7d   : > { %s1590_s18 = sshll.u32 %s1759_s22, 4  ;;  %s1591_s18 = int_to_ptr.vmem [resolvable:$false] %s1590_s18 }
  0x7e   : > { %p1588_p9 = pnand %p1586_p12, %p2317_p3  ;;  %s1592_s26 = scalar_lea.vmem %s1591_s18, 32 }
  0x7f   : > { %p1593_p1 = scmp.lt.s32.totalorder %s225_s0, %s1591_s18  ;;  %p1594_p0 = scmp.lt.s32.totalorder %s1592_s26, %s1585_s24 }
  0x80   : > { %p1589_p4 = pneg %p1588_p9 }
  0x81   : > { %p1595_p7 = por %p1594_p0, %p1593_p1 }
  0x83   : > { %p1596_p13 = pnand %p1595_p7, %p1589_p4 }
  0x85   : > { %1599 = shalt.err (!%p1596_p13)
}
  0x86   : > { %1375 = dma.hbm_to_vmem [thread:$0]  (!%p1882_p6), %s2043_s10, 16, %s225_s0, %s1889_s30  }
  0x87   : > { %p2318_p8 = scmp.ne.s32.totalorder %s2298_s29, 0 }
  0x88   : > { %s235_s15 = sand.u32 (!%p2318_p8), 1, %s1726_s19   ;;  %p2319_p5 = scmp.ne.s32.totalorder (!%p2318_p8), %s2303_s27, 0 }
  0x89   : > { %233 = sbr.rel (%p2318_p8) target bundleno = 442 (0x1ba), region = 32  ;;  %s1091_s5 = sshll.u32 (!%p2318_p8), %s235_s15, 8 }
  0x8a   : > { %s236_s20 = scalar_lea.sflag (!%p2318_p8), [#allocation4], %s235_s15  ;;  %s2070_s3 = scalar_lea.vmem (!%p2318_p8), [#allocation3], %s1091_s5 }
  0x90   : > { %1685 = dma.done.wait (%p2319_p5), %s236_s20, 4096  }
  0x91   : > { %1687 = vsyncadd (%p2319_p5), %s236_s20, 4294963200  ;;  %s244_s0 = sand.u32 1, %s1925_s4   ;;  %s246_s30 = sand.u32 1, %s1714_s16  }
  0x92   : > { %s1092_s11 = sshll.u32 %s246_s30, 6  ;;  %s245_s29 = scalar_lea.sflag [#allocation7], %s244_s0 }
  0x93   : > { %s2080_s10 = scalar_lea.vmem [#allocation6], %s1092_s11  ;;  %p2320_p6 = scmp.ne.s32.totalorder %s2305_s7, 0 }
  0x95   : > { %1689 = dma.done.wait (%p2320_p6), %s245_s29, 1040  }
  0x96   : > { %1691 = vsyncadd (%p2320_p6), %s245_s29, 4294966256  ;;  %v1502_v0 = vld [vmem:[%s2080_s10] sm:$0xff]   ;;  %v1503_v1 = vld [vmem:[%s2080_s10 + $0x8] sm:$0xff]   ;;  %s285_s4 = sand.u32 1, %s1702_s13   ;;  %s256_s27 = scalar_lea.vmem [#allocation8], %s246_s30 }
  0x97   : > { %1293 = vmatprep.subr.bf16.mxu0 %v1502_v0  ;;  %1341 = vmatprep.subr.bf16.mxu1 %v1502_v0  ;;  %v1504_v2 = vld [vmem:[%s2080_s10 + $0x10] sm:$0xff]   ;;  %v1505_v3 = vld [vmem:[%s2080_s10 + $0x18] sm:$0xff]   ;;  %v360_v4 = vld [vmem:[%s2070_s3] sm:$0xff]  ;;  %s1093_s7 = sshll.u32 %s285_s4, 7  ;;  %s2321_s6 = sld [smem:[#allocation15_spill]] }
  0x98   : > { %1294 = vmatpush3.bf16.msra.mxu0 %v1502_v0  ;;  %1349 = vmatpush3.bf16.msra.mxu1 %v1502_v0  ;;  %v361_v5 = vld [vmem:[%s2070_s3 + $0x8] sm:$0xff]  ;;  %v376_v6 = vld [vmem:[%s2070_s3 + $0x80] sm:$0xff]  ;;  %v1508_v12 = vld [vmem:[%s2080_s10 + $0x30] sm:$0xff]   ;;  %s2141_s21 = scalar_lea.vmem [#allocation9], %s1093_s7  ;;  %s2322_s1 = sld [smem:[#allocation14_spill]] }
  0x99   : > { %1295 = vmatprep.subr.bf16.mxu0 %v1503_v1  ;;  %1342 = vmatprep.subr.bf16.mxu1 %v1503_v1  ;;  %v392_v7 = vpack.c.bf16 %v361_v5, %v360_v4  ;;  %v377_v8 = vld [vmem:[%s2070_s3 + $0x88] sm:$0xff]  ;;  %v1506_v10 = vld [vmem:[%s2080_s10 + $0x20] sm:$0xff]   ;;  %v1509_v13 = vld [vmem:[%s2080_s10 + $0x38] sm:$0xff]   ;;  %s947_s18 = sshll.u32 %s2141_s21, 4  ;;  %s2323_s5 = sld [smem:[#allocation24_spill]]  ;;  %s2187_s18 = int_to_ptr.vmem [resolvable:$true] %s947_s18 }
  0x9a   : > { %v400_v9 = vpack.c.bf16 %v377_v8, %v376_v6  ;;  %v1507_v11 = vld [vmem:[%s2080_s10 + $0x28] sm:$0xff]   ;;  %v362_v14 = vld [vmem:[%s2070_s3 + $0x10] sm:$0xff]  ;;  %v363_v15 = vld [vmem:[%s2070_s3 + $0x18] sm:$0xff]  ;;  %s1600_s0 = scalar_lea.vmem %s2187_s18, 2048  ;;  %p2324_p11 = scmp.ne.s32.totalorder %s2310_s28, 0 }
  0x9b   : > { %1309 = vmatprep.mubr.bf16.mxu0 %v392_v7  ;;  %v378_v16 = vld [vmem:[%s2070_s3 + $0x90] sm:$0xff]  ;;  %v379_v17 = vld [vmem:[%s2070_s3 + $0x98] sm:$0xff]  ;;  %v364_v18 = vld [vmem:[%s2070_s3 + $0x20] sm:$0xff]  ;;  %v393_v22 = vpack.c.bf16 %v363_v15, %v362_v14  ;;  %p1601_p2 = scmp.ne.s32.totalorder %s2187_s18, %s1600_s0  ;;  %s1760_s30 = smov [#allocation9]  }
  0x9c   : > { %1296 = vmatpush3.bf16.msra.mxu0 %v1503_v1  ;;  %1350 = vmatpush3.bf16.msra.mxu1 %v1503_v1  ;;  %v365_v19 = vld [vmem:[%s2070_s3 + $0x28] sm:$0xff]  ;;  %v380_v20 = vld [vmem:[%s2070_s3 + $0xa0] sm:$0xff]  ;;  %v401_v23 = vpack.c.bf16 %v379_v17, %v378_v16  ;;  %v366_v26 = vld [vmem:[%s2070_s3 + $0x30] sm:$0xff]  ;;  %s1604_s11 = sshll.u32 %s1760_s30, 4  ;;  %s1605_s11 = int_to_ptr.vmem [resolvable:$false] %s1604_s11 }
  0x9d   : > { %1297 = vmatprep.subr.bf16.mxu0 %v1504_v2  ;;  %1343 = vmatprep.subr.bf16.mxu1 %v1504_v2  ;;  %v381_v21 = vld [vmem:[%s2070_s3 + $0xa8] sm:$0xff]  ;;  %v394_v24 = vpack.c.bf16 %v365_v19, %v364_v18  ;;  %v367_v27 = vld [vmem:[%s2070_s3 + $0x38] sm:$0xff]  ;;  %v382_v28 = vld [vmem:[%s2070_s3 + $0xb0] sm:$0xff]  ;;  %s1357_s9 = smul.u32 96, %s2321_s6  ;;  %p1602_p10 = pnand %p1601_p2, %p2324_p11 }
  0x9e   : > { %1325 = vmatprep.mubr.bf16.mxu1 %v400_v9  ;;  %v402_v25 = vpack.c.bf16 %v381_v21, %v380_v20  ;;  %v383_v29 = vld [vmem:[%s2070_s3 + $0xb8] sm:$0xff]  ;;  %v368_v30 = vld [vmem:[%s2070_s3 + $0x40] sm:$0xff]  ;;  %v369_v31 = vld [vmem:[%s2070_s3 + $0x48] sm:$0xff]  ;;  %v395_v34 = vpack.c.bf16 %v367_v27, %v366_v26  ;;  %s1606_s29 = scalar_lea.vmem %s1605_s11, 4096  ;;  %p1607_p3 = scmp.lt.s32.totalorder %s2187_s18, %s1605_s11 }
  0x9f   : > { %v384_v32 = vld [vmem:[%s2070_s3 + $0xc0] sm:$0xff]  ;;  %v385_v33 = vld [vmem:[%s2070_s3 + $0xc8] sm:$0xff]  ;;  %v403_v35 = vpack.c.bf16 %v383_v29, %v382_v28  ;;  %v396_v36 = vpack.c.bf16 %v369_v31, %v368_v30  ;;  %v370_v38 = vld [vmem:[%s2070_s3 + $0x50] sm:$0xff]  ;;  %s944_s24 = sadd.s32 %s2322_s1, %s1357_s9  ;;  %p1603_p12 = pneg %p1602_p10 }
  0xa0   : > { %1298 = vmatpush3.bf16.msra.mxu0 %v1504_v2  ;;  %1351 = vmatpush3.bf16.msra.mxu1 %v1504_v2  ;;  %v404_v37 = vpack.c.bf16 %v385_v33, %v384_v32  ;;  %v371_v39 = vld [vmem:[%s2070_s3 + $0x58] sm:$0xff]  ;;  %v386_v40 = vld [vmem:[%s2070_s3 + $0xd0] sm:$0xff]  ;;  %v372_v42 = vld [vmem:[%s2070_s3 + $0x60] sm:$0xff]  ;;  %s1138_s22 = sshll.u32 %s944_s24, 6  ;;  %p1608_p9 = scmp.lt.s32.totalorder %s1606_s29, %s1600_s0 }
  0xa1   : > { %1299 = vmatprep.subr.bf16.mxu0 %v1505_v3  ;;  %1344 = vmatprep.subr.bf16.mxu1 %v1505_v3  ;;  %v387_v41 = vld [vmem:[%s2070_s3 + $0xd8] sm:$0xff]  ;;  %v373_v43 = vld [vmem:[%s2070_s3 + $0x68] sm:$0xff]  ;;  %v388_v44 = vld [vmem:[%s2070_s3 + $0xe0] sm:$0xff]  ;;  %v397_v46 = vpack.c.bf16 %v371_v39, %v370_v38  ;;  %s2185_s20 = scalar_lea.hbm %s2323_s5, %s1138_s22 }
  0xa2   : > { %v389_v45 = vld [vmem:[%s2070_s3 + $0xe8] sm:$0xff]  ;;  %v405_v47 = vpack.c.bf16 %v387_v41, %v386_v40  ;;  %v398_v48 = vpack.c.bf16 %v373_v43, %v372_v42  ;;  %v374_v50 = vld [vmem:[%s2070_s3 + $0x70] sm:$0xff]  ;;  %v375_v51 = vld [vmem:[%s2070_s3 + $0x78] sm:$0xff]  ;;  %p1609_p4 = por %p1608_p9, %p1607_p3 }
  0xa3   : > { %v406_v49 = vpack.c.bf16 %v389_v45, %v388_v44  ;;  %v390_v52 = vld [vmem:[%s2070_s3 + $0xf0] sm:$0xff]  ;;  %v391_v53 = vld [vmem:[%s2070_s3 + $0xf8] sm:$0xff]  ;;  %v399_v54 = vpack.c.bf16 %v375_v51, %v374_v50  ;;  %v2129_v57 = vld [vmem:[%s256_s27] ss:$0 sm:$0xff]  ;;  %s2195_s3 = scalar_lea.sflag [#allocation5], %s285_s4 }
  0xa4   : > { %1300 = vmatpush3.bf16.msra.mxu0 %v1505_v3  ;;  %1352 = vmatpush3.bf16.msra.mxu1 %v1505_v3  ;;  %v407_v55 = vpack.c.bf16 %v391_v53, %v390_v52  ;;  %p1610_p1 = pnand %p1609_p4, %p1603_p12 }
  0xa5   : > { %1301 = vmatprep.subr.bf16.mxu0 %v1506_v10  ;;  %1345 = vmatprep.subr.bf16.mxu1 %v1506_v10 }
  0xa8   : > { %1302 = vmatpush3.bf16.msra.mxu0 %v1506_v10  ;;  %1353 = vmatpush3.bf16.msra.mxu1 %v1506_v10 }
  0xa9   : > { %1303 = vmatprep.subr.bf16.mxu0 %v1507_v11  ;;  %1346 = vmatprep.subr.bf16.mxu1 %v1507_v11 }
  0xac   : > { %1304 = vmatpush3.bf16.msra.mxu0 %v1507_v11  ;;  %1354 = vmatpush3.bf16.msra.mxu1 %v1507_v11 }
  0xad   : > { %1305 = vmatprep.subr.bf16.mxu0 %v1508_v12  ;;  %1347 = vmatprep.subr.bf16.mxu1 %v1508_v12 }
  0xb0   : > { %1306 = vmatpush3.bf16.msra.mxu0 %v1508_v12  ;;  %1355 = vmatpush3.bf16.msra.mxu1 %v1508_v12 }
  0xb1   : > { %1307 = vmatprep.subr.bf16.mxu0 %v1509_v13  ;;  %1348 = vmatprep.subr.bf16.mxu1 %v1509_v13 }
  0xb4   : > { %1308 = vmatpush3.bf16.msra.mxu0 %v1509_v13  ;;  %1356 = vmatpush3.bf16.msra.mxu1 %v1509_v13 }
  0xb7   : > { %1310 = vmatmul.mubr.bf16.vlgmr.msra.gmra.mrb[0].mxu0 %v393_v22  ;;  %1326 = vmatmul.mubr.bf16.vlgmr.msra.gmra.mrb[0].mxu1 %v401_v23 }
  0xb8   : > { %1313 = vmatprep.mubr.bf16.mxu0 %v394_v24  ;;  %1329 = vmatprep.mubr.bf16.mxu1 %v402_v25 }
  0xbf   : > { %1314 = vmatmul.mubr.bf16.gmra.mrb[4].mxu0 %v395_v34  ;;  %1330 = vmatmul.mubr.bf16.gmra.mrb[4].mxu1 %v403_v35 }
  0xc0   : > { %1317 = vmatprep.mubr.bf16.mxu0 %v396_v36  ;;  %1333 = vmatprep.mubr.bf16.mxu1 %v404_v37 }
  0xc7   : > { %1318 = vmatmul.mubr.bf16.gmra.mrb[8].mxu0 %v397_v46  ;;  %1334 = vmatmul.mubr.bf16.gmra.mrb[8].mxu1 %v405_v47 }
  0xc8   : > { %1321 = vmatprep.mubr.bf16.mxu0 %v398_v48  ;;  %1337 = vmatprep.mubr.bf16.mxu1 %v406_v49 }
  0xcf   : > { %1322 = vmatmul.mubr.bf16.gmra.mrb[12].mxu0 %v399_v54  ;;  %1338 = vmatmul.mubr.bf16.gmra.mrb[12].mxu1 %v407_v55 }
 0x18a   : > { %v1311_v56 = vpop.f32.mrb[0].mxu0  ;;  %v1327_v58 = vpop.f32.mrb[0].mxu1 }
 0x18b   : > { %v506_v59 = vpop.f32.mrb[1].mxu0  ;;  %v570_v60 = vpop.f32.mrb[1].mxu1  ;;  %v741_v63 = vadd.f32 %v1311_v56, %v2129_v57  ;;  %v757_v0 = vadd.f32 %v1327_v58, %v2129_v57 }
 0x18c   : > { %v1312_v61 = vpop.f32.mrb[2].mxu0  ;;  %v1328_v62 = vpop.f32.mrb[2].mxu1  ;;  %v739_v5 = vadd.f32 %v2129_v57, %v506_v59  ;;  %v755_v6 = vadd.f32 %v2129_v57, %v570_v60 }
 0x18d   : > { %v742_v1 = vadd.f32 %v1312_v61, %v2129_v57  ;;  %v758_v2 = vadd.f32 %v1328_v62, %v2129_v57  ;;  %v509_v3 = vpop.f32.mrb[3].mxu0  ;;  %v573_v4 = vpop.f32.mrb[3].mxu1 }
 0x18e   : > { %v740_v7 = vadd.f32 %v2129_v57, %v509_v3  ;;  %v756_v8 = vadd.f32 %v2129_v57, %v573_v4 }
 0x18f   : > { %v1182_v9 = vpack.c.bf16 %v742_v1, %v741_v63  ;;  %v1222_v10 = vpack.c.bf16 %v758_v2, %v757_v0 }
 0x190   : > { %v1177_v11 = vpack.c.bf16 %v740_v7, %v739_v5  ;;  %v1217_v12 = vpack.c.bf16 %v756_v8, %v755_v6 }
 0x191   : > { %1254 = vst [vmem:[%s2141_s21 + $0x8] sm:$0xff] %v1182_v9   ;;  %1262 = vst [vmem:[%s2141_s21 + $0x48] sm:$0xff] %v1222_v10  }
 0x192   : > { %1178 = vst [vmem:[%s2141_s21] sm:$0xff] %v1177_v11   ;;  %1261 = vst [vmem:[%s2141_s21 + $0x40] sm:$0xff] %v1217_v12   ;;  %v1315_v13 = vpop.f32.mrb[4].mxu0  ;;  %v1331_v14 = vpop.f32.mrb[4].mxu1 }
 0x193   : > { %v522_v15 = vpop.f32.mrb[5].mxu0  ;;  %v586_v16 = vpop.f32.mrb[5].mxu1  ;;  %v745_v19 = vadd.f32 %v1315_v13, %v2129_v57  ;;  %v761_v20 = vadd.f32 %v1331_v14, %v2129_v57 }
 0x194   : > { %v1316_v17 = vpop.f32.mrb[6].mxu0  ;;  %v1332_v18 = vpop.f32.mrb[6].mxu1  ;;  %v743_v25 = vadd.f32 %v2129_v57, %v522_v15  ;;  %v759_v26 = vadd.f32 %v2129_v57, %v586_v16 }
 0x195   : > { %v746_v21 = vadd.f32 %v1316_v17, %v2129_v57  ;;  %v762_v22 = vadd.f32 %v1332_v18, %v2129_v57  ;;  %v525_v23 = vpop.f32.mrb[7].mxu0  ;;  %v589_v24 = vpop.f32.mrb[7].mxu1 }
 0x196   : > { %v744_v27 = vadd.f32 %v2129_v57, %v525_v23  ;;  %v760_v28 = vadd.f32 %v2129_v57, %v589_v24 }
 0x197   : > { %v1192_v29 = vpack.c.bf16 %v746_v21, %v745_v19  ;;  %v1232_v30 = vpack.c.bf16 %v762_v22, %v761_v20 }
 0x198   : > { %v1187_v31 = vpack.c.bf16 %v744_v27, %v743_v25  ;;  %v1227_v32 = vpack.c.bf16 %v760_v28, %v759_v26 }
 0x199   : > { %1256 = vst [vmem:[%s2141_s21 + $0x18] sm:$0xff] %v1192_v29   ;;  %1264 = vst [vmem:[%s2141_s21 + $0x58] sm:$0xff] %v1232_v30  }
 0x19a   : > { %1255 = vst [vmem:[%s2141_s21 + $0x10] sm:$0xff] %v1187_v31   ;;  %1263 = vst [vmem:[%s2141_s21 + $0x50] sm:$0xff] %v1227_v32   ;;  %v1319_v33 = vpop.f32.mrb[8].mxu0  ;;  %v1335_v34 = vpop.f32.mrb[8].mxu1 }
 0x19b   : > { %v538_v35 = vpop.f32.mrb[9].mxu0  ;;  %v602_v36 = vpop.f32.mrb[9].mxu1  ;;  %v749_v39 = vadd.f32 %v1319_v33, %v2129_v57  ;;  %v765_v40 = vadd.f32 %v1335_v34, %v2129_v57 }
 0x19c   : > { %v1320_v37 = vpop.f32.mrb[10].mxu0  ;;  %v1336_v38 = vpop.f32.mrb[10].mxu1  ;;  %v747_v45 = vadd.f32 %v2129_v57, %v538_v35  ;;  %v763_v46 = vadd.f32 %v2129_v57, %v602_v36 }
 0x19d   : > { %v750_v41 = vadd.f32 %v1320_v37, %v2129_v57  ;;  %v766_v42 = vadd.f32 %v1336_v38, %v2129_v57  ;;  %v541_v43 = vpop.f32.mrb[11].mxu0  ;;  %v605_v44 = vpop.f32.mrb[11].mxu1 }
 0x19e   : > { %v748_v47 = vadd.f32 %v2129_v57, %v541_v43  ;;  %v764_v48 = vadd.f32 %v2129_v57, %v605_v44 }
 0x19f   : > { %v1202_v49 = vpack.c.bf16 %v750_v41, %v749_v39  ;;  %v1242_v50 = vpack.c.bf16 %v766_v42, %v765_v40 }
 0x1a0   : > { %v1197_v51 = vpack.c.bf16 %v748_v47, %v747_v45  ;;  %v1237_v52 = vpack.c.bf16 %v764_v48, %v763_v46 }
 0x1a1   : > { %1258 = vst [vmem:[%s2141_s21 + $0x28] sm:$0xff] %v1202_v49   ;;  %1266 = vst [vmem:[%s2141_s21 + $0x68] sm:$0xff] %v1242_v50  }
 0x1a2   : > { %1257 = vst [vmem:[%s2141_s21 + $0x20] sm:$0xff] %v1197_v51   ;;  %1265 = vst [vmem:[%s2141_s21 + $0x60] sm:$0xff] %v1237_v52   ;;  %v1323_v53 = vpop.f32.mrb[12].mxu0  ;;  %v1339_v54 = vpop.f32.mrb[12].mxu1 }
 0x1a3   : > { %v554_v55 = vpop.f32.mrb[13].mxu0  ;;  %v618_v56 = vpop.f32.mrb[13].mxu1  ;;  %v753_v60 = vadd.f32 %v1323_v53, %v2129_v57  ;;  %v769_v61 = vadd.f32 %v1339_v54, %v2129_v57 }
 0x1a4   : > { %v1324_v58 = vpop.f32.mrb[14].mxu0  ;;  %v1340_v59 = vpop.f32.mrb[14].mxu1  ;;  %v751_v2 = vadd.f32 %v2129_v57, %v554_v55  ;;  %v767_v3 = vadd.f32 %v2129_v57, %v618_v56 }
 0x1a5   : > { %v754_v62 = vadd.f32 %v1324_v58, %v2129_v57  ;;  %v770_v63 = vadd.f32 %v1340_v59, %v2129_v57  ;;  %v557_v0 = vpop.f32.mrb[15].mxu0  ;;  %v621_v1 = vpop.f32.mrb[15].mxu1 }
 0x1a6   : > { %v752_v4 = vadd.f32 %v2129_v57, %v557_v0  ;;  %v768_v5 = vadd.f32 %v2129_v57, %v621_v1 }
 0x1a7   : > { %v1212_v6 = vpack.c.bf16 %v754_v62, %v753_v60  ;;  %v1252_v7 = vpack.c.bf16 %v770_v63, %v769_v61 }
 0x1a8   : > { %v1207_v8 = vpack.c.bf16 %v752_v4, %v751_v2  ;;  %v1247_v9 = vpack.c.bf16 %v768_v5, %v767_v3 }
 0x1a9   : > { %1260 = vst [vmem:[%s2141_s21 + $0x38] sm:$0xff] %v1212_v6   ;;  %1268 = vst [vmem:[%s2141_s21 + $0x78] sm:$0xff] %v1252_v7  }
 0x1aa   : > { %1259 = vst [vmem:[%s2141_s21 + $0x30] sm:$0xff] %v1207_v8   ;;  %1267 = vst [vmem:[%s2141_s21 + $0x70] sm:$0xff] %v1247_v9  }
 0x1ab   : > { %1613 = shalt.err (!%p1610_p1)
}
 0x1ac   : > { %s1614_s10 = scalar_lea.hbm %s2185_s20, 2048  ;;  %s1618_s7 = scalar_lea.hbm %s2323_s5, 12288 }
 0x1ad   : > { %p1615_p0 = scmp.ne.s32.totalorder %s2185_s20, %s1614_s10  ;;  %p1619_p8 = scmp.lt.u32.totalorder %s2185_s20, %s2323_s5 }
 0x1ae   : > { %p1620_p5 = scmp.lt.u32.totalorder %s1618_s7, %s1614_s10  ;;  %p1622_p2 = scmp.lt.u32.totalorder %s1614_s10, %s2185_s20 }
 0x1af   : > { %p1616_p7 = pnand %p1615_p0, %p2324_p11 }
 0x1b0   : > { %p1621_p6 = por %p1620_p5, %p1619_p8 }
 0x1b1   : > { %p1617_p13 = pneg %p1616_p7 }
 0x1b2   : > { %p1623_p10 = por %p1622_p2, %p1621_p6 }
 0x1b4   : > { %p1624_p12 = pnand %p1623_p10, %p1617_p13 }
 0x1b6   : > { %1627 = shalt.err (!%p1624_p12)
}
 0x1b7   : > { %s1761_s1 = smov 64   ;;  %s1762_s9 = smov 192  }
 0x1b8   : > { %s1763_s24 = smov 4  }
 0x1b9   : > { %1364 = dma.vmem_to_hbm [thread:$0]  (%p2324_p11), %s2187_s18, 2048, %s2185_s20, %s2195_s3, %s1761_s1, %s1762_s9, %s1763_s24  }
 0x1ba PF: > { %p1381_p3 = scmp.ge.s32.totalorder %s1750_s25, 2  ;;  %s962_s22 = sand.u32 1, %s1698_s12  }
 0x1bb   : > { %p2325_p9 = scmp.ne.s32.totalorder %s2311_s8, 0  ;;  %s963_s26 = scalar_lea.sflag [#allocation5], %s962_s22 }
 0x1bd   : > { %p1377_p4 = pnand %p1381_p3, %p2325_p9 }
 0x1bf   : > { %1693 = dma.done.wait (!%p1377_p4), %s963_s26, 2048  }
 0x1c0   : > { %1695 = vsyncadd (!%p1377_p4), %s963_s26, 4294965248  ;;  %s22_s25 = sadd.s32 1, %s1750_s25   ;;  %s2327_s28 = sld [smem:[#allocation21_spill]] }
 0x1c1   : > { %p2224_p1 = scmp.ge.s32.totalorder %s22_s25, 8   ;;  %s2328_s18 = sld [smem:[#allocation19_spill]] }
 0x1c2   : > { %s2329_s20 = sld [smem:[#allocation13_spill]]  ;;  %s2330_s3 = sld [smem:[#allocation20_spill]] }
 0x1c3   : > { %s2331_s22 = sld [smem:[#allocation16_spill]]  ;;  %s2332_s8 = sld [smem:[#allocation17_spill]] }
 0x1c4   : > { %s2333_s24 = sld [smem:[#allocation18_spill]]  ;;  %s2335_s12 = smov %s1702_s13 }
 0x1c5   : > { %s2336_s13 = smov %s1706_s14  ;;  %s2338_s15 = smov %s1714_s16 }
 0x1c6   : > { %s2337_s14 = smov %s2327_s28  ;;  %s2339_s16 = smov %s1718_s17 }
 0x1c7   : > { %s2340_s17 = smov %s2328_s18  ;;  %s2341_s18 = smov %s1726_s19 }
 0x1c8   : > { %s2342_s19 = smov %s2329_s20  ;;  %s2343_s20 = smov %s2330_s3 }
 0x1c9   : > { %s2344_s21 = smov %s1742_s23  ;;  %s2345_s23 = smov %s2332_s8 }
 0x1ca   :  { %21 = sbr.rel (!%p2224_p1) target bundleno = 16 (0x10), region = 109 }
 0x1d1   :  { %968 = vsyncpa [#allocation4], 1 }
 0x1d2   :  { %970 = vsyncpa [#allocation4 + $0x1], 1 }
 0x1d3   :  { %971 = vsyncpa [#allocation7], 1 }
 0x1d4   :  { %973 = vsyncpa [#allocation7 + $0x1], 1 }
 0x1d5   :  { %974 = vsyncpa [#allocation5], 1 }
 0x1d6   :  { %976 = vsyncpa [#allocation5 + $0x1], 1 }

</bundles_post_ra>
